<compile_context>
chip_gen: v5e
topology: v5e:2x2
jax: 0.10.0
libtpu: 0.0.40
codegen_flags: <defaults>
</compile_context>

<pallas_src>
import jax
import jax.numpy as jnp
from jax.experimental import pallas as pl
from jax.experimental.pallas import tpu as pltpu

LANE = 128            # TPU lane width (minor dim of a vreg)
BF16_SUBLANE = 16     # bf16 packs 16 rows per sublane group


def mlp_kernel(x_ref, w1_ref, b1_ref, w2_ref, b2_ref, w3_ref, b3_ref, o_ref):
    """One batch tile of Linear->ReLU->Linear->ReLU->Linear.

    x_ref and the weights are bf16 (MXU fast path); accumulation, bias add and
    ReLU are f32 (safe on v5e, which has no bf16 VPU path).
    """
    cd = w1_ref.dtype
    # layer 0: Linear + ReLU
    h = jnp.dot(x_ref[...], w1_ref[...], preferred_element_type=jnp.float32)
    h = jnp.maximum(h + b1_ref[...], 0.0)
    # layer 1: Linear + ReLU
    h = jnp.dot(h.astype(cd), w2_ref[...], preferred_element_type=jnp.float32)
    h = jnp.maximum(h + b2_ref[...], 0.0)
    # layer 2: Linear (no activation, matching the final nn.Linear)
    out = jnp.dot(h.astype(cd), w3_ref[...], preferred_element_type=jnp.float32) + b3_ref[...]
    o_ref[...] = out.astype(o_ref.dtype)


def _round_up(n, m):
    return -(-n // m) * m


def _pad_axis(a, axis, target):
    if a.shape[axis] == target:
        return a
    widths = [(0, 0)] * a.ndim
    widths[axis] = (0, target - a.shape[axis])
    return jnp.pad(a, widths)


def _pad2(a, rows, cols):
    return _pad_axis(_pad_axis(a, 0, rows), 1, cols)


def prepare_params(params, compute_dtype=jnp.bfloat16):
    """One-time parameter prep: lane-pad feature dims and cast weights to bf16.

    Hoisted out of the per-call path: jnp.pad / astype materialize full HBM
    copies of every weight, which should not be paid on every forward call.
    Zero padding is exact: padded input lanes / weight rows / bias entries are
    0, so padded channels stay 0 through bias add and ReLU.
    """
    (w1, b1), (w2, b2), (w3, b3) = params
    d_in, h1 = w1.shape
    h2, d_out = w2.shape[1], w3.shape[1]
    d_in_p, h1_p, h2_p, d_out_p = (_round_up(d, LANE) for d in (d_in, h1, h2, d_out))

    padded = (
        _pad2(w1, d_in_p, h1_p).astype(compute_dtype),
        _pad_axis(b1, 1, h1_p).astype(jnp.float32),
        _pad2(w2, h1_p, h2_p).astype(compute_dtype),
        _pad_axis(b2, 1, h2_p).astype(jnp.float32),
        _pad2(w3, h2_p, d_out_p).astype(compute_dtype),
        _pad_axis(b3, 1, d_out_p).astype(jnp.float32),
    )
    dims = (d_in, h1, h2, d_out)  # static python ints
    return padded, dims


def _choose_tile_m(batch, tile_m):
    """Batch tile: multiple of 16 (bf16 sublane), no larger than needed, and
    split into >=2 grid steps for large batches so the 'parallel' batch axis
    can shard across both v7x TensorCores."""
    tile_m = max(BF16_SUBLANE, (tile_m // BF16_SUBLANE) * BF16_SUBLANE)
    tile_m = min(tile_m, _round_up(batch, BF16_SUBLANE))
    if pl.cdiv(batch, tile_m) == 1 and batch >= 16 * BF16_SUBLANE:
        tile_m = _round_up(pl.cdiv(batch, 2), BF16_SUBLANE)
    return tile_m


def sequential_mlp(x, padded_params, dims, *, tile_m=512, compute_dtype=jnp.bfloat16):
    """Fused Sequential-MLP forward pass as a single Pallas kernel.

    x:             [B, d_in] float32
    padded_params: prepare_params(params)[0]
    dims:          prepare_params(params)[1] (static)
    """
    w1_p, b1_p, w2_p, b2_p, w3_p, b3_p = padded_params
    d_in, h1, h2, d_out = dims
    B = x.shape[0]
    assert x.shape[1] == d_in, f"expected x[-1]=={d_in}, got {x.shape[1]}"
    d_in_p, h1_p = w1_p.shape
    h2_p, d_out_p = w2_p.shape[1], w3_p.shape[1]

    # Lane-pad x's feature dim (must be exact zeros: it enters the contraction)
    # and pre-cast to the MXU dtype -> half the x DMA bytes, no in-kernel cast.
    x_p = _pad_axis(x, 1, d_in_p).astype(compute_dtype)

    # Batch is NOT padded: cdiv grid with a partial last block (output writes
    # are masked; garbage rows only correspond to rows that don't exist).
    tile_m = _choose_tile_m(B, tile_m)
    grid = (pl.cdiv(B, tile_m),)

    # Weights & biases: whole arrays resident in VMEM (no blocking), copied in
    # once and NOT double-buffered.
    # NOTE: for hidden sizes too large for full residency (first hit on v7x's
    # 64 MiB/TC), add an N/K grid axis (or per-layer calls with an f32 VMEM
    # accumulator) instead of keeping all three weights resident.
    resident = pl.BlockSpec(memory_space=pltpu.MemorySpace.VMEM)
    in_specs = [
        pl.BlockSpec((tile_m, d_in_p), lambda i: (i, 0)),  # x batch tile (pipelined)
        resident, resident,   # w1, b1
        resident, resident,   # w2, b2
        resident, resident,   # w3, b3
    ]
    out_spec = pl.BlockSpec((tile_m, d_out_p), lambda i: (i, 0))  # lane-dense output

    # VMEM budget from actual buffers: resident weights/biases (single copy),
    # double-buffered x/out tiles, f32 intermediate activation tiles + slack.
    cd_bytes = jnp.dtype(compute_dtype).itemsize
    resident_bytes = (w1_p.size + w2_p.size + w3_p.size) * cd_bytes \
                   + (b1_p.size + b2_p.size + b3_p.size) * 4
    x_tile_bytes = tile_m * d_in_p * cd_bytes
    o_tile_bytes = tile_m * d_out_p * 4
    act_bytes = tile_m * (h1_p + h2_p) * 4
    vmem_needed = resident_bytes + 2 * (x_tile_bytes + o_tile_bytes) + 2 * act_bytes
    vmem_limit = max(16 << 20, min(int(vmem_needed * 1.5) + (2 << 20), 56 << 20))

    flops = 2 * grid[0] * tile_m * (d_in_p * h1_p + h1_p * h2_p + h2_p * d_out_p)
    bytes_accessed = int(x_p.size * cd_bytes + B * d_out_p * 4 + resident_bytes)

    out_p = pl.pallas_call(
        mlp_kernel,
        out_shape=jax.ShapeDtypeStruct((B, d_out_p), jnp.float32),
        grid_spec=pltpu.PrefetchScalarGridSpec(
            num_scalar_prefetch=0,
            grid=grid,
            in_specs=in_specs,
            out_specs=out_spec,
        ),
        compiler_params=pltpu.CompilerParams(
            dimension_semantics=("parallel",),   # batch steps shard across v7x's 2 TCs
            vmem_limit_bytes=vmem_limit,
        ),
        cost_estimate=pl.CostEstimate(
            flops=flops, transcendentals=0, bytes_accessed=bytes_accessed
        ),
    )(x_p, w1_p, b1_p, w2_p, b2_p, w3_p, b3_p)

    # Strip the feature padding (batch was never padded).
    return out_p[:, :d_out]


def init_linear(key, fan_in, fan_out):
    """Deterministic init matching nn.Linear's default U(-1/sqrt(fan_in), +...)."""
    kw, kb = jax.random.split(key)
    bound = 1.0 / jnp.sqrt(fan_in)
    # stored as [in, out] so the kernel does x @ W
    w = jax.random.uniform(kw, (fan_in, fan_out), jnp.float32, -bound, bound)
    b = jax.random.uniform(kb, (1, fan_out), jnp.float32, -bound, bound)
    return w, b


def reference_forward(x, params, compute_dtype=jnp.float32):
    """Pure-JAX reference for Sequential(Linear, ReLU, Linear, ReLU, Linear).

    compute_dtype=bf16 mirrors the kernel's mixed-precision policy (bf16 MXU
    operands, f32 accumulation / bias / ReLU).
    """
    (w1, b1), (w2, b2), (w3, b3) = params

    def dense(h, w, b):
        return jnp.dot(h.astype(compute_dtype), w.astype(compute_dtype),
                       preferred_element_type=jnp.float32) + b

    h = jnp.maximum(dense(x, w1, b1), 0.0)
    h = jnp.maximum(dense(h, w2, b2), 0.0)
    return dense(h, w3, b3)


if __name__ == "__main__":
    B, D_IN, H1, H2, D_OUT = 16, 32, 64, 32, 16

    key = jax.random.PRNGKey(0)
    k_x, k1, k2, k3 = jax.random.split(key, 4)

    x = jax.random.normal(k_x, (B, D_IN), dtype=jnp.float32)
    params = (
        init_linear(k1, D_IN, H1),
        init_linear(k2, H1, H2),
        init_linear(k3, H2, D_OUT),
    )

    # One-time parameter prep (pad + bf16 cast), hoisted out of the forward path.
    padded_params, dims = prepare_params(params)

    fwd = jax.jit(sequential_mlp, static_argnums=(2,))
    out = jax.block_until_ready(fwd(x, padded_params, dims))
    assert out.shape == (B, D_OUT)

    # Tight check against a reference that mirrors the kernel's precision policy
    # (bf16 MXU operands, f32 accumulation).
    ref_mp = reference_forward(x, params, compute_dtype=jnp.bfloat16)
    assert jnp.allclose(out, ref_mp, atol=1e-3, rtol=1e-3), "mismatch vs mixed-precision reference"

    # Looser check against the full-f32 PyTorch-equivalent reference
    # (tolerance loosened because weights/activations are quantized to bf16).
    ref_f32 = reference_forward(x, params)
    assert jnp.allclose(out, ref_f32, atol=1e-1, rtol=1e-1), "mismatch vs f32 reference"

    print("KERNEL_OK")
</pallas_src>

<mosaic_0001>
module attributes {stable_mosaic.version = 11 : i64} {
  func.func @mlp_kernel(%arg0: i32, %arg1: memref<16x128xbf16, #tpu.memory_space<vmem>>, %arg2: memref<128x128xbf16, #tpu.memory_space<vmem>>, %arg3: memref<1x128xf32, #tpu.memory_space<vmem>>, %arg4: memref<128x128xbf16, #tpu.memory_space<vmem>>, %arg5: memref<1x128xf32, #tpu.memory_space<vmem>>, %arg6: memref<128x128xbf16, #tpu.memory_space<vmem>>, %arg7: memref<1x128xf32, #tpu.memory_space<vmem>>, %arg8: memref<16x128xf32, #tpu.memory_space<vmem>>) attributes {dimension_semantics = [#tpu.dimension_semantics<parallel>], iteration_bounds = array<i64: 1>, scalar_prefetch = 0 : i64, scratch_operands = 0 : i64, tpu.core_type = #tpu.core_type<tc>, window_params = [{transform_indices = @transform_0, window_bounds = array<i64: 16, 128>}, {pipeline_mode = #tpu.pipeline_mode<synchronous>, transform_indices = @transform_1, window_bounds = array<i64: 128, 128>}, {pipeline_mode = #tpu.pipeline_mode<synchronous>, transform_indices = @transform_2, window_bounds = array<i64: 1, 128>}, {pipeline_mode = #tpu.pipeline_mode<synchronous>, transform_indices = @transform_3, window_bounds = array<i64: 128, 128>}, {pipeline_mode = #tpu.pipeline_mode<synchronous>, transform_indices = @transform_4, window_bounds = array<i64: 1, 128>}, {pipeline_mode = #tpu.pipeline_mode<synchronous>, transform_indices = @transform_5, window_bounds = array<i64: 128, 128>}, {pipeline_mode = #tpu.pipeline_mode<synchronous>, transform_indices = @transform_6, window_bounds = array<i64: 1, 128>}, {transform_indices = @transform_7, window_bounds = array<i64: 16, 128>}]} {
    %c0 = arith.constant 0 : index
    %c0_0 = arith.constant 0 : index
    %0 = vector.load %arg1[%c0, %c0_0] : memref<16x128xbf16, #tpu.memory_space<vmem>>, vector<16x128xbf16>
    %c0_1 = arith.constant 0 : index
    %c0_2 = arith.constant 0 : index
    %1 = vector.load %arg2[%c0_1, %c0_2] : memref<128x128xbf16, #tpu.memory_space<vmem>>, vector<128x128xbf16>
    %cst = arith.constant dense<0.000000e+00> : vector<16x128xf32>
    %2 = tpu.matmul %0, %1, %cst {dimension_numbers = #tpu.dot_dimension_numbers<[1], [0], [0], [1], [0, 0, 1, 1], [], []>} : vector<16x128xbf16>, vector<128x128xbf16>, vector<16x128xf32> -> vector<16x128xf32>
    %c0_3 = arith.constant 0 : index
    %c0_4 = arith.constant 0 : index
    %3 = vector.load %arg3[%c0_3, %c0_4] : memref<1x128xf32, #tpu.memory_space<vmem>>, vector<1x128xf32>
    %4 = vector.broadcast %3 : vector<1x128xf32> to vector<16x128xf32>
    %5 = arith.addf %2, %4 : vector<16x128xf32>
    %cst_5 = arith.constant 0.000000e+00 : f32
    %6 = vector.broadcast %cst_5 : f32 to vector<16x128xf32>
    %7 = arith.maximumf %5, %6 : vector<16x128xf32>
    %8 = arith.truncf %7 : vector<16x128xf32> to vector<16x128xbf16>
    %c0_6 = arith.constant 0 : index
    %c0_7 = arith.constant 0 : index
    %9 = vector.load %arg4[%c0_6, %c0_7] : memref<128x128xbf16, #tpu.memory_space<vmem>>, vector<128x128xbf16>
    %cst_8 = arith.constant dense<0.000000e+00> : vector<16x128xf32>
    %10 = tpu.matmul %8, %9, %cst_8 {dimension_numbers = #tpu.dot_dimension_numbers<[1], [0], [0], [1], [0, 0, 1, 1], [], []>} : vector<16x128xbf16>, vector<128x128xbf16>, vector<16x128xf32> -> vector<16x128xf32>
    %c0_9 = arith.constant 0 : index
    %c0_10 = arith.constant 0 : index
    %11 = vector.load %arg5[%c0_9, %c0_10] : memref<1x128xf32, #tpu.memory_space<vmem>>, vector<1x128xf32>
    %12 = vector.broadcast %11 : vector<1x128xf32> to vector<16x128xf32>
    %13 = arith.addf %10, %12 : vector<16x128xf32>
    %cst_11 = arith.constant 0.000000e+00 : f32
    %14 = vector.broadcast %cst_11 : f32 to vector<16x128xf32>
    %15 = arith.maximumf %13, %14 : vector<16x128xf32>
    %16 = arith.truncf %15 : vector<16x128xf32> to vector<16x128xbf16>
    %c0_12 = arith.constant 0 : index
    %c0_13 = arith.constant 0 : index
    %17 = vector.load %arg6[%c0_12, %c0_13] : memref<128x128xbf16, #tpu.memory_space<vmem>>, vector<128x128xbf16>
    %cst_14 = arith.constant dense<0.000000e+00> : vector<16x128xf32>
    %18 = tpu.matmul %16, %17, %cst_14 {dimension_numbers = #tpu.dot_dimension_numbers<[1], [0], [0], [1], [0, 0, 1, 1], [], []>} : vector<16x128xbf16>, vector<128x128xbf16>, vector<16x128xf32> -> vector<16x128xf32>
    %c0_15 = arith.constant 0 : index
    %c0_16 = arith.constant 0 : index
    %19 = vector.load %arg7[%c0_15, %c0_16] : memref<1x128xf32, #tpu.memory_space<vmem>>, vector<1x128xf32>
    %20 = vector.broadcast %19 : vector<1x128xf32> to vector<16x128xf32>
    %21 = arith.addf %18, %20 : vector<16x128xf32>
    %c0_17 = arith.constant 0 : index
    %c0_18 = arith.constant 0 : index
    %22 = vector.load %arg8[%c0_17, %c0_18] : memref<16x128xf32, #tpu.memory_space<vmem>>, vector<16x128xf32>
    tpu.vector_store %arg8[%c0_17, %c0_18], %21 {strides = array<i32>} : memref<16x128xf32, #tpu.memory_space<vmem>>, vector<16x128xf32>,
    return
  }
  func.func @transform_0(%arg0: i32) -> (i32, i32) {
    %c0_i32 = arith.constant 0 : i32
    %c0_i32_0 = arith.constant 0 : i32
    return %arg0, %c0_i32 : i32, i32
  }
  func.func @transform_1(%arg0: i32) -> (i32, i32) {
    %c0_i32 = arith.constant 0 : i32
    %c0_i32_0 = arith.constant 0 : i32
    %c0_i32_1 = arith.constant 0 : i32
    return %c0_i32, %c0_i32_0 : i32, i32
  }
  func.func @transform_2(%arg0: i32) -> (i32, i32) {
    %c0_i32 = arith.constant 0 : i32
    %c0_i32_0 = arith.constant 0 : i32
    %c0_i32_1 = arith.constant 0 : i32
    return %c0_i32, %c0_i32_0 : i32, i32
  }
  func.func @transform_3(%arg0: i32) -> (i32, i32) {
    %c0_i32 = arith.constant 0 : i32
    %c0_i32_0 = arith.constant 0 : i32
    %c0_i32_1 = arith.constant 0 : i32
    return %c0_i32, %c0_i32_0 : i32, i32
  }
  func.func @transform_4(%arg0: i32) -> (i32, i32) {
    %c0_i32 = arith.constant 0 : i32
    %c0_i32_0 = arith.constant 0 : i32
    %c0_i32_1 = arith.constant 0 : i32
    return %c0_i32, %c0_i32_0 : i32, i32
  }
  func.func @transform_5(%arg0: i32) -> (i32, i32) {
    %c0_i32 = arith.constant 0 : i32
    %c0_i32_0 = arith.constant 0 : i32
    %c0_i32_1 = arith.constant 0 : i32
    return %c0_i32, %c0_i32_0 : i32, i32
  }
  func.func @transform_6(%arg0: i32) -> (i32, i32) {
    %c0_i32 = arith.constant 0 : i32
    %c0_i32_0 = arith.constant 0 : i32
    %c0_i32_1 = arith.constant 0 : i32
    return %c0_i32, %c0_i32_0 : i32, i32
  }
  func.func @transform_7(%arg0: i32) -> (i32, i32) {
    %c0_i32 = arith.constant 0 : i32
    %c0_i32_0 = arith.constant 0 : i32
    return %arg0, %c0_i32 : i32, i32
  }
}

</mosaic_0001>

<bundles_post_ra>
// kernel: sequential_mlp.1
= control target key start
LH: loop header
LB: loop body
LE: loop exit
PB: predicated region body
PF: predicated region fallthrough
CT: control target
= control target key end

     0   :  { %12 = vsyncpa [#allocation3], 0  ;;  %s666_s0 = inlined_call_operand.vmem [shape: bf16[16,128], index: 0, kind: input, shape index: {}]   ;;  %s667_s1 = inlined_call_operand.hbm [shape: bf16[128,128], index: 1, kind: input, shape index: {}]   ;;  %s668_s2 = inlined_call_operand.vmem [shape: f32[1,128], index: 2, kind: input, shape index: {}]   ;;  %s669_s3 = inlined_call_operand.hbm [shape: bf16[128,128], index: 3, kind: input, shape index: {}]   ;;  %s670_s4 = inlined_call_operand.vmem [shape: f32[1,128], index: 4, kind: input, shape index: {}]   ;;  %s671_s5 = inlined_call_operand.hbm [shape: bf16[128,128], index: 5, kind: input, shape index: {}]   ;;  %s672_s6 = inlined_call_operand.vmem [shape: f32[1,128], index: 6, kind: input, shape index: {}]   ;;  %s673_s7 = inlined_call_operand.hbm [shape: f32[16,128], index: 7, kind: output, shape index: {}]  }
   0x1   :  { %13 = vsyncpa [#allocation6], 0 }
   0x2   :  { %14 = vsyncpa [#allocation4], 0  ;;  %s36_s26 = sshll.u32 %s669_s3, 4  ;;  %s594_s27 = smov [#allocation5]   ;;  %s37_s26 = int_to_ptr.hbm [resolvable:$true] %s36_s26 }
   0x3   :  { %s38_s28 = sshll.u32 %s594_s27, 4  ;;  %s21_s8 = sshll.u32 %s667_s1, 4  ;;  %s39_s28 = int_to_ptr.vmem [resolvable:$true] %s38_s28  ;;  %s22_s8 = int_to_ptr.hbm [resolvable:$true] %s21_s8 }
   0x4   :  { %s595_s9 = smov 64   ;;  %s596_s10 = smov 4  }
   0x5   :  { %44 = dma.hbm_to_vmem [thread:$0]  %s37_s26, 1024, %s39_s28, [#allocation6], %s595_s9, %s595_s9, %s596_s10  }
   0x6   :  { %s597_s11 = smov [#allocation2]   ;;  %s51_s15 = sshll.u32 %s671_s5, 4  ;;  %s52_s15 = int_to_ptr.hbm [resolvable:$true] %s51_s15 }
   0x7   :  { %s23_s12 = sshll.u32 %s597_s11, 4  ;;  %s598_s3 = smov [#allocation7]   ;;  %s24_s12 = int_to_ptr.vmem [resolvable:$true] %s23_s12 }
   0x8   :  { %29 = dma.hbm_to_vmem [thread:$0]  %s22_s8, 1024, %s24_s12, [#allocation3], %s595_s9, %s595_s9, %s596_s10  }
   0x9   :  { %s53_s16 = sshll.u32 %s598_s3, 4  ;;  %s54_s16 = int_to_ptr.vmem [resolvable:$true] %s53_s16 }
   0xa   :  { %59 = dma.hbm_to_vmem [thread:$0]  %s52_s15, 1024, %s54_s16, [#allocation6], %s595_s9, %s595_s9, %s596_s10  }
   0xb   :  { %588 = dma.done.wait [#allocation3], 1024  }
   0xc   :  { %589 = vsyncadd [#allocation3], 4294966272 }
   0xd   :  { %590 = dma.done.wait [#allocation6], 2048  }
   0xe   :  { %591 = vsyncadd [#allocation6], 4294965248  ;;  %v464_v0 = vld [vmem:[#allocation2 + $0x38] sm:$0xff]  ;;  %v463_v1 = vld [vmem:[#allocation2 + $0x30] sm:$0xff]  ;;  %s599_s21 = smov [#allocation8]   ;;  %s600_s25 = smov 128  }
   0xf   :  { %150 = vmatpush.bf16.msra.mxu0 %v464_v0  ;;  %v472_v2 = vld [vmem:[#allocation5 + $0x38] sm:$0xff]  ;;  %v471_v3 = vld [vmem:[#allocation5 + $0x30] sm:$0xff]  ;;  %v462_v4 = vld [vmem:[#allocation2 + $0x28] sm:$0xff]  ;;  %s340_s22 = sshll.u32 %s599_s21, 4  ;;  %s601_s26 = smov 8   ;;  %s341_s22 = int_to_ptr.vmem [resolvable:$true] %s340_s22 }
  0x10   :  { %235 = vmatpush.bf16.msra.mxu1 %v472_v2  ;;  %v470_v5 = vld [vmem:[#allocation5 + $0x28] sm:$0xff]  ;;  %v461_v6 = vld [vmem:[#allocation2 + $0x20] sm:$0xff]  ;;  %v460_v8 = vld [vmem:[#allocation2 + $0x18] sm:$0xff] }
  0x11   :  { %v469_v7 = vld [vmem:[#allocation5 + $0x20] sm:$0xff]  ;;  %v459_v9 = vld [vmem:[#allocation2 + $0x10] sm:$0xff]  ;;  %v458_v10 = vld [vmem:[#allocation2 + $0x8] sm:$0xff] }
  0x12   :  { %v457_v11 = vld [vmem:[#allocation2] sm:$0xff]  ;;  %v468_v13 = vld [vmem:[#allocation5 + $0x18] sm:$0xff]  ;;  %v467_v14 = vld [vmem:[#allocation5 + $0x10] sm:$0xff] }
  0x13   :  { %151 = vmatpush.bf16.msra.mxu0 %v463_v1  ;;  %v456_v12 = vld [vmem:[%s666_s0] sm:$0xff]  ;;  %v466_v15 = vld [vmem:[#allocation5 + $0x8] sm:$0xff]  ;;  %v480_v17 = vld [vmem:[#allocation7 + $0x38] sm:$0xff] }
  0x14   :  { %236 = vmatpush.bf16.msra.mxu1 %v471_v3  ;;  %v465_v16 = vld [vmem:[#allocation5] sm:$0xff]  ;;  %320 = vmatpush.bf16.msra.mxu2 %v480_v17  ;;  %v479_v18 = vld [vmem:[#allocation7 + $0x30] sm:$0xff]  ;;  %v478_v19 = vld [vmem:[#allocation7 + $0x28] sm:$0xff] }
  0x15   :  { %v477_v20 = vld [vmem:[#allocation7 + $0x20] sm:$0xff]  ;;  %v476_v29 = vld [vmem:[#allocation7 + $0x18] sm:$0xff]  ;;  %v475_v30 = vld [vmem:[#allocation7 + $0x10] sm:$0xff] }
  0x16   :  { %v489_v22 = vld [vmem:[%s668_s2] ss:$0 sm:$0xff]  ;;  %v474_v31 = vld [vmem:[#allocation7 + $0x8] sm:$0xff] }
  0x17   :  { %152 = vmatpush.bf16.msra.mxu0 %v462_v4  ;;  %v473_v32 = vld [vmem:[#allocation7] sm:$0xff] }
  0x18   :  { %237 = vmatpush.bf16.msra.mxu1 %v470_v5  ;;  %321 = vmatpush.bf16.msra.mxu2 %v479_v18  ;;  %v490_v34 = vld [vmem:[%s670_s4] ss:$0 sm:$0xff]  ;;  %s342_s4 = sshll.u32 %s673_s7, 4  ;;  %s343_s4 = int_to_ptr.hbm [resolvable:$true] %s342_s4 }
  0x19   :  { %v491_v41 = vld [vmem:[%s672_s6] ss:$0 sm:$0xff] }
  0x1b   :  { %153 = vmatpush.bf16.msra.mxu0 %v461_v6 }
  0x1c   :  { %238 = vmatpush.bf16.msra.mxu1 %v469_v7  ;;  %322 = vmatpush.bf16.msra.mxu2 %v478_v19 }
  0x1f   :  { %154 = vmatpush.bf16.msra.mxu0 %v460_v8 }
  0x20   :  { %239 = vmatpush.bf16.msra.mxu1 %v468_v13  ;;  %323 = vmatpush.bf16.msra.mxu2 %v477_v20 }
  0x23   :  { %155 = vmatpush.bf16.msra.mxu0 %v459_v9 }
  0x24   :  { %240 = vmatpush.bf16.msra.mxu1 %v467_v14  ;;  %324 = vmatpush.bf16.msra.mxu2 %v476_v29 }
  0x27   :  { %156 = vmatpush.bf16.msra.mxu0 %v458_v10 }
  0x28   :  { %241 = vmatpush.bf16.msra.mxu1 %v466_v15  ;;  %325 = vmatpush.bf16.msra.mxu2 %v475_v30 }
  0x2b   :  { %157 = vmatpush.bf16.msra.mxu0 %v457_v11 }
  0x2c   :  { %242 = vmatpush.bf16.msra.mxu1 %v465_v16  ;;  %326 = vmatpush.bf16.msra.mxu2 %v474_v31 }
  0x2e   :  { %158 = vmatmul.bf16.vlgmr.msra.gmra.mxu0 %v456_v12 }
  0x30   :  { %327 = vmatpush.bf16.msra.mxu2 %v473_v32 }
  0xab   :  { %v159_v21 = vpop.f32.mrf.mxu0 }
  0xac   :  { %v160_v23 = vadd.f32 %v489_v22, %v159_v21 }
  0xae   :  { %v164_v26 = vmax.f32 %v160_v23, 0.0 }
  0xb3   :  { %v161_v24 = vpop.f32.mrf.mxu0 }
  0xb4   :  { %v162_v25 = vadd.f32 %v489_v22, %v161_v24 }
  0xb6   :  { %v165_v27 = vmax.f32 %v162_v25, 0.0 }
  0xb8   :  { %v166_v28 = vpack.c.bf16 %v165_v27, %v164_v26 }
  0xba   :  { %243 = vmatmul.bf16.vlgmr.msra.gmra.mxu1 %v166_v28 }
 0x137   :  { %v244_v33 = vpop.f32.mrf.mxu1 }
 0x138   :  { %v245_v35 = vadd.f32 %v490_v34, %v244_v33 }
 0x13a   :  { %v249_v38 = vmax.f32 %v245_v35, 0.0 }
 0x13f   :  { %v246_v36 = vpop.f32.mrf.mxu1 }
 0x140   :  { %v247_v37 = vadd.f32 %v490_v34, %v246_v36 }
 0x142   :  { %v250_v39 = vmax.f32 %v247_v37, 0.0 }
 0x144   :  { %v251_v40 = vpack.c.bf16 %v250_v39, %v249_v38 }
 0x146   :  { %328 = vmatmul.bf16.vlgmr.msra.gmra.mxu2 %v251_v40 }
 0x1c9   :  { %v329_v42 = vpop.f32.mrf.mxu2 }
 0x1ca   :  { %v330_v43 = vadd.f32 %v491_v41, %v329_v42 }
 0x1cc   :  { %334 = vst [vmem:[#allocation8] sm:$0xff] %v330_v43 }
 0x1d1   :  { %v331_v44 = vpop.f32.mrf.mxu2 }
 0x1d2   :  { %v332_v45 = vadd.f32 %v491_v41, %v331_v44 }
 0x1d4   :  { %335 = vst [vmem:[#allocation8 + $0x8] sm:$0xff] %v332_v45 }
 0x1d5   :  { %348 = dma.vmem_to_hbm [thread:$0]  %s341_s22, 256, %s343_s4, [#allocation4], %s600_s25, %s600_s25, %s601_s26  }
 0x1d6   :  { %592 = dma.done.wait [#allocation4], 256  }
 0x1d7   :  { %593 = vsyncadd [#allocation4], 4294967040 }
 0x1d8   :  { %353 = vsyncpa [#allocation3], 1 }
 0x1d9   :  { %354 = vsyncpa [#allocation6], 1 }
 0x1da   :  { %355 = vsyncpa [#allocation4], 1 }

</bundles_post_ra>
